<compile_context>
chip_gen: v7x
topology: tpu7x:2x2x1
jax: 0.10.0
libtpu: 0.0.40
codegen_flags: <defaults>
</compile_context>

<pallas_src>
import jax
import jax.numpy as jnp
import numpy as np
from jax.experimental import pallas as pl
from jax.experimental.pallas import tpu as pltpu

# ---- static problem sizes (consistent with the module's forward) ----
B = 8            # batch
INPUT_LEN = 6    # number of features of x
MONO_LEN = 2     # number of monotone input columns (t)
NUM_NEURON = 16  # neurons in fc1
OUTPUT_NUM = 3   # number of SMM heads
K = 6            # SMM internal width (fixed in the torch module)
EMBED = NUM_NEURON + MONO_LEN        # 18 = SMM input width ([t, relu(fc1(x))])
G = K * OUTPUT_NUM                   # 18 packed columns per j, col = i*3 + o
XIN_W = INPUT_LEN + MONO_LEN         # 8 packed input columns = [x | t]

# ---- parameter-slab layout (rows are 8-aligned per block) ----
SLAB_W = 128                          # lane-dense rows, one contiguous DMA
R_FC1_W = 0                           # rows 0..7  : fc1 weight ext  [8, 16]
R_FC1_B = 8                           # row  8     : fc1 bias        [1, 16]
R_INV_BETA = 9                        # row  9     : exp(-beta)      [1, 3]
R_GAMMA = 10                          # row 10     : gamma           [1, 3]
R_SMM = 16                            # per-j blocks start here
SMM_BLOCK = 32                        # rows per j block
#   base+0..7  : Wt_ext_j [8, 18]  (rows 0..5 zero, rows 6..7 = squared t-wts)
#   base+8..23 : Wh_j     [16, 18] (squared weights acting on h1)
#   base+24    : b_j      [1, 18]
N_ROWS = R_SMM + K * SMM_BLOCK        # 208


def smm_multihead_kernel(xin_ref, p_ref, out_ref):
    # xin_ref: [tile_B, 8] = [x | t]     p_ref: [208, 128] packed params
    # out_ref: [tile_B, OUTPUT_NUM]
    xin = xin_ref[...]                                             # [B, 8]

    # ---- fc1 + ReLU (t columns multiply zero weight rows -> ignored exactly)
    w1 = p_ref[R_FC1_W:R_FC1_W + 8, 0:NUM_NEURON]                  # [8, 16]
    b1 = p_ref[R_FC1_B:R_FC1_B + 1, 0:NUM_NEURON]                  # [1, 16]
    h1 = jnp.maximum(
        jnp.dot(xin, w1, preferred_element_type=jnp.float32) + b1, 0.0)

    # ---- per-j SMM pre-activations: h_j = xt @ Wsq_j + b_j, xt = [t, h1].
    # Each j uses its own 8-aligned ref block (free static ref slices), so the
    # LSE over j below is whole-slab elementwise work — no live-vreg lane cuts.
    hs = []
    for j in range(K):
        base = R_SMM + j * SMM_BLOCK
        wt = p_ref[base:base + 8, 0:G]                             # [8, 18]
        wh = p_ref[base + 8:base + 24, 0:G]                        # [16, 18]
        bj = p_ref[base + 24:base + 25, 0:G]                       # [1, 18]
        hj = (jnp.dot(xin, wt, preferred_element_type=jnp.float32)
              + jnp.dot(h1, wh, preferred_element_type=jnp.float32)
              + bj)                                                # [B, 18]
        hs.append(hj)

    # ---- first grouped logsumexp (over j), elementwise across the 6 slabs
    m = hs[0]
    for j in range(1, K):
        m = jnp.maximum(m, hs[j])
    s = jnp.exp(hs[0] - m)
    for j in range(1, K):
        s = s + jnp.exp(hs[j] - m)
    lse1 = m + jnp.log(s)                                          # [B, 18]

    # ---- second grouped logsumexp (over i) on -lse1; the six [B,3] lane
    # slices are hoisted once and reused by both the max and the exp pass.
    neg = -lse1
    parts = [neg[:, i * OUTPUT_NUM:(i + 1) * OUTPUT_NUM] for i in range(K)]
    m2 = parts[0]
    for i in range(1, K):
        m2 = jnp.maximum(m2, parts[i])
    s2 = jnp.exp(parts[0] - m2)
    for i in range(1, K):
        s2 = s2 + jnp.exp(parts[i] - m2)
    lse2 = m2 + jnp.log(s2)                                        # [B, 3]

    # ---- epilogue for all heads: y = -lse2 * exp(-beta) + gamma
    inv_beta = p_ref[R_INV_BETA:R_INV_BETA + 1, 0:OUTPUT_NUM]      # [1, 3]
    gamma = p_ref[R_GAMMA:R_GAMMA + 1, 0:OUTPUT_NUM]               # [1, 3]
    y = -lse2 * inv_beta + gamma
    out_ref[...] = jax.nn.sigmoid(y)                               # [B, 3]


def pack_params(w1, b1, w_smm, b_smm, beta, gamma):
    """One-time (init) packing of every parameter into a single [208,128] slab.

    w_smm: [O, K_i, EMBED, K_j], b_smm: [O, K_i, 1, K_j].
    Packed column index within each j block is col = i*OUTPUT_NUM + o.
    """
    w_sq = (w_smm * w_smm).astype(jnp.float32)                     # [O,Ki,E,Kj]
    wall = jnp.transpose(w_sq, (3, 2, 1, 0)).reshape(K, EMBED, G)  # [Kj,E,18]
    ball = jnp.transpose(b_smm[:, :, 0, :].astype(jnp.float32),
                         (2, 1, 0)).reshape(K, G)                  # [Kj,18]
    wall_np = np.asarray(wall, np.float32)
    ball_np = np.asarray(ball, np.float32)

    p = np.zeros((N_ROWS, SLAB_W), np.float32)
    p[R_FC1_W:R_FC1_W + INPUT_LEN, 0:NUM_NEURON] = np.asarray(w1, np.float32)
    p[R_FC1_B, 0:NUM_NEURON] = np.asarray(b1, np.float32).reshape(-1)
    p[R_INV_BETA, 0:OUTPUT_NUM] = np.asarray(jnp.exp(-beta), np.float32).reshape(-1)
    p[R_GAMMA, 0:OUTPUT_NUM] = np.asarray(gamma, np.float32).reshape(-1)
    for j in range(K):
        base = R_SMM + j * SMM_BLOCK
        # rows 0..5 of Wt_ext stay zero (x columns of xin), rows 6..7 = t-wts
        p[base + INPUT_LEN:base + INPUT_LEN + MONO_LEN, 0:G] = wall_np[j, 0:MONO_LEN]
        p[base + 8:base + 24, 0:G] = wall_np[j, MONO_LEN:EMBED]
        p[base + 24, 0:G] = ball_np[j]
    return jnp.asarray(p)


def smm_multihead_forward(x, t, params, *, tile_b=None):
    bsz = x.shape[0]
    xin = jnp.concatenate([x.astype(jnp.float32), t.astype(jnp.float32)],
                          axis=1)                                  # [B, 8]
    if tile_b is None:
        tile_b = bsz                       # single block for small batches
    assert bsz % tile_b == 0 and tile_b % 8 == 0
    grid = (bsz // tile_b,)
    # Note: for large batched deployments, out_ref is only 3 lanes wide per
    # step (masked stores); a transposed [OUTPUT_NUM, tile_b] output would be
    # lane-dense. At B=8 with grid=(1,) it is a single negligible store.

    flops = 2 * bsz * (XIN_W * NUM_NEURON + K * (XIN_W * G + NUM_NEURON * G))
    cost = pl.CostEstimate(
        flops=flops,
        transcendentals=bsz * (K * G + G + K * OUTPUT_NUM + 2 * OUTPUT_NUM),
        bytes_accessed=bsz * XIN_W * 4 + N_ROWS * SLAB_W * 4 + bsz * OUTPUT_NUM * 4)

    return pl.pallas_call(
        smm_multihead_kernel,
        out_shape=jax.ShapeDtypeStruct((bsz, OUTPUT_NUM), jnp.float32),
        grid_spec=pltpu.PrefetchScalarGridSpec(
            num_scalar_prefetch=0,
            grid=grid,
            in_specs=[pl.BlockSpec((tile_b, XIN_W), lambda r: (r, 0)),
                      pl.BlockSpec((N_ROWS, SLAB_W), lambda r: (0, 0))],
            out_specs=pl.BlockSpec((tile_b, OUTPUT_NUM), lambda r: (r, 0))),
        compiler_params=pltpu.CompilerParams(
            dimension_semantics=("parallel",)),
        cost_estimate=cost,
    )(xin, params)


def reference_forward(x, t, w1, b1, w_smm, b_smm, beta, gamma):
    # plain-JAX reference mirroring the PyTorch forward
    h1 = jax.nn.relu(x @ w1 + b1[0])
    xt = jnp.concatenate([t, h1], axis=1)
    outs = []
    for o in range(OUTPUT_NUM):
        hs = []
        for i in range(K):
            w2 = w_smm[o, i] ** 2
            h = xt @ w2 + b_smm[o, i, 0]
            hs.append(jax.scipy.special.logsumexp(h, axis=1, keepdims=True))
        hcat = jnp.concatenate(hs, axis=1)
        y = -jax.scipy.special.logsumexp(-hcat, axis=1) / jnp.exp(beta[o]) + gamma[o]
        outs.append(jax.nn.sigmoid(y)[:, None])
    return jnp.concatenate(outs, axis=1)


if __name__ == "__main__":
    key = jax.random.PRNGKey(0)
    keys = jax.random.split(key, 8)

    # inputs
    x = jax.random.normal(keys[0], (B, INPUT_LEN), dtype=jnp.float32)
    t = jax.random.uniform(keys[1], (B, MONO_LEN), dtype=jnp.float32)

    # fc1 parameters
    w1 = jax.random.normal(keys[2], (INPUT_LEN, NUM_NEURON), dtype=jnp.float32)
    w1 = w1 * (1.0 / np.sqrt(INPUT_LEN))
    b1 = jax.random.normal(keys[3], (1, NUM_NEURON), dtype=jnp.float32) * 0.1

    # SMM parameters: uniform(0,1) like the torch init, stacked over heads.
    w_smm = jax.random.uniform(keys[4], (OUTPUT_NUM, K, EMBED, K), dtype=jnp.float32)
    b_smm = jax.random.uniform(keys[5], (OUTPUT_NUM, K, 1, K), dtype=jnp.float32)
    beta = jnp.ones((OUTPUT_NUM,), dtype=jnp.float32)    # torch init: ones
    gamma = jnp.zeros((OUTPUT_NUM,), dtype=jnp.float32)  # torch init: zeros

    # One-time parameter packing (off the per-forward critical path).
    params = pack_params(w1, b1, w_smm, b_smm, beta, gamma)

    fwd = jax.jit(smm_multihead_forward)
    out = jax.block_until_ready(fwd(x, t, params))

    ref = reference_forward(x, t, w1, b1, w_smm, b_smm, beta, gamma)
    np.testing.assert_allclose(np.asarray(out), np.asarray(ref), rtol=1e-4, atol=1e-4)

    print("KERNEL_OK")
</pallas_src>

<mosaic_0001>
module attributes {stable_mosaic.version = 11 : i64} {
  func.func @smm_multihead_kernel(%arg0: i32, %arg1: memref<8x8xf32, #tpu.memory_space<vmem>>, %arg2: memref<208x128xf32, #tpu.memory_space<vmem>>, %arg3: memref<8x3xf32, #tpu.memory_space<vmem>>) attributes {dimension_semantics = [#tpu.dimension_semantics<parallel>], iteration_bounds = array<i64: 1>, scalar_prefetch = 0 : i64, scratch_operands = 0 : i64, tpu.core_type = #tpu.core_type<tc>, window_params = [{transform_indices = @transform_0, window_bounds = array<i64: 8, 8>}, {pipeline_mode = #tpu.pipeline_mode<synchronous>, transform_indices = @transform_1, window_bounds = array<i64: 208, 128>}, {transform_indices = @transform_2, window_bounds = array<i64: 8, 3>}]} {
    %c0 = arith.constant 0 : index
    %c0_0 = arith.constant 0 : index
    %0 = vector.load %arg1[%c0, %c0_0] : memref<8x8xf32, #tpu.memory_space<vmem>>, vector<8x8xf32>
    %c0_1 = arith.constant 0 : index
    %c0_2 = arith.constant 0 : index
    %1 = vector.load %arg2[%c0_1, %c0_2] : memref<208x128xf32, #tpu.memory_space<vmem>>, vector<8x16xf32>
    %c8 = arith.constant 8 : index
    %c0_3 = arith.constant 0 : index
    %2 = vector.load %arg2[%c8, %c0_3] : memref<208x128xf32, #tpu.memory_space<vmem>>, vector<1x16xf32>
    %cst = arith.constant dense<0.000000e+00> : vector<8x16xf32>
    %3 = tpu.matmul %0, %1, %cst {dimension_numbers = #tpu.dot_dimension_numbers<[1], [0], [0], [1], [0, 0, 1, 1], [], []>} : vector<8x8xf32>, vector<8x16xf32>, vector<8x16xf32> -> vector<8x16xf32>
    %4 = vector.broadcast %2 : vector<1x16xf32> to vector<8x16xf32>
    %5 = arith.addf %3, %4 : vector<8x16xf32>
    %cst_4 = arith.constant 0.000000e+00 : f32
    %6 = vector.broadcast %cst_4 : f32 to vector<8x16xf32>
    %7 = arith.maximumf %5, %6 : vector<8x16xf32>
    %c16 = arith.constant 16 : index
    %c0_5 = arith.constant 0 : index
    %8 = vector.load %arg2[%c16, %c0_5] : memref<208x128xf32, #tpu.memory_space<vmem>>, vector<8x18xf32>
    %c24 = arith.constant 24 : index
    %c0_6 = arith.constant 0 : index
    %9 = vector.load %arg2[%c24, %c0_6] : memref<208x128xf32, #tpu.memory_space<vmem>>, vector<16x18xf32>
    %c40 = arith.constant 40 : index
    %c0_7 = arith.constant 0 : index
    %10 = vector.load %arg2[%c40, %c0_7] : memref<208x128xf32, #tpu.memory_space<vmem>>, vector<1x18xf32>
    %cst_8 = arith.constant dense<0.000000e+00> : vector<8x18xf32>
    %11 = tpu.matmul %0, %8, %cst_8 {dimension_numbers = #tpu.dot_dimension_numbers<[1], [0], [0], [1], [0, 0, 1, 1], [], []>} : vector<8x8xf32>, vector<8x18xf32>, vector<8x18xf32> -> vector<8x18xf32>
    %cst_9 = arith.constant dense<0.000000e+00> : vector<8x18xf32>
    %12 = tpu.matmul %7, %9, %cst_9 {dimension_numbers = #tpu.dot_dimension_numbers<[1], [0], [0], [1], [0, 0, 1, 1], [], []>} : vector<8x16xf32>, vector<16x18xf32>, vector<8x18xf32> -> vector<8x18xf32>
    %13 = arith.addf %11, %12 : vector<8x18xf32>
    %14 = vector.broadcast %10 : vector<1x18xf32> to vector<8x18xf32>
    %15 = arith.addf %13, %14 : vector<8x18xf32>
    %c48 = arith.constant 48 : index
    %c0_10 = arith.constant 0 : index
    %16 = vector.load %arg2[%c48, %c0_10] : memref<208x128xf32, #tpu.memory_space<vmem>>, vector<8x18xf32>
    %c56 = arith.constant 56 : index
    %c0_11 = arith.constant 0 : index
    %17 = vector.load %arg2[%c56, %c0_11] : memref<208x128xf32, #tpu.memory_space<vmem>>, vector<16x18xf32>
    %c72 = arith.constant 72 : index
    %c0_12 = arith.constant 0 : index
    %18 = vector.load %arg2[%c72, %c0_12] : memref<208x128xf32, #tpu.memory_space<vmem>>, vector<1x18xf32>
    %cst_13 = arith.constant dense<0.000000e+00> : vector<8x18xf32>
    %19 = tpu.matmul %0, %16, %cst_13 {dimension_numbers = #tpu.dot_dimension_numbers<[1], [0], [0], [1], [0, 0, 1, 1], [], []>} : vector<8x8xf32>, vector<8x18xf32>, vector<8x18xf32> -> vector<8x18xf32>
    %cst_14 = arith.constant dense<0.000000e+00> : vector<8x18xf32>
    %20 = tpu.matmul %7, %17, %cst_14 {dimension_numbers = #tpu.dot_dimension_numbers<[1], [0], [0], [1], [0, 0, 1, 1], [], []>} : vector<8x16xf32>, vector<16x18xf32>, vector<8x18xf32> -> vector<8x18xf32>
    %21 = arith.addf %19, %20 : vector<8x18xf32>
    %22 = vector.broadcast %18 : vector<1x18xf32> to vector<8x18xf32>
    %23 = arith.addf %21, %22 : vector<8x18xf32>
    %c80 = arith.constant 80 : index
    %c0_15 = arith.constant 0 : index
    %24 = vector.load %arg2[%c80, %c0_15] : memref<208x128xf32, #tpu.memory_space<vmem>>, vector<8x18xf32>
    %c88 = arith.constant 88 : index
    %c0_16 = arith.constant 0 : index
    %25 = vector.load %arg2[%c88, %c0_16] : memref<208x128xf32, #tpu.memory_space<vmem>>, vector<16x18xf32>
    %c104 = arith.constant 104 : index
    %c0_17 = arith.constant 0 : index
    %26 = vector.load %arg2[%c104, %c0_17] : memref<208x128xf32, #tpu.memory_space<vmem>>, vector<1x18xf32>
    %cst_18 = arith.constant dense<0.000000e+00> : vector<8x18xf32>
    %27 = tpu.matmul %0, %24, %cst_18 {dimension_numbers = #tpu.dot_dimension_numbers<[1], [0], [0], [1], [0, 0, 1, 1], [], []>} : vector<8x8xf32>, vector<8x18xf32>, vector<8x18xf32> -> vector<8x18xf32>
    %cst_19 = arith.constant dense<0.000000e+00> : vector<8x18xf32>
    %28 = tpu.matmul %7, %25, %cst_19 {dimension_numbers = #tpu.dot_dimension_numbers<[1], [0], [0], [1], [0, 0, 1, 1], [], []>} : vector<8x16xf32>, vector<16x18xf32>, vector<8x18xf32> -> vector<8x18xf32>
    %29 = arith.addf %27, %28 : vector<8x18xf32>
    %30 = vector.broadcast %26 : vector<1x18xf32> to vector<8x18xf32>
    %31 = arith.addf %29, %30 : vector<8x18xf32>
    %c112 = arith.constant 112 : index
    %c0_20 = arith.constant 0 : index
    %32 = vector.load %arg2[%c112, %c0_20] : memref<208x128xf32, #tpu.memory_space<vmem>>, vector<8x18xf32>
    %c120 = arith.constant 120 : index
    %c0_21 = arith.constant 0 : index
    %33 = vector.load %arg2[%c120, %c0_21] : memref<208x128xf32, #tpu.memory_space<vmem>>, vector<16x18xf32>
    %c136 = arith.constant 136 : index
    %c0_22 = arith.constant 0 : index
    %34 = vector.load %arg2[%c136, %c0_22] : memref<208x128xf32, #tpu.memory_space<vmem>>, vector<1x18xf32>
    %cst_23 = arith.constant dense<0.000000e+00> : vector<8x18xf32>
    %35 = tpu.matmul %0, %32, %cst_23 {dimension_numbers = #tpu.dot_dimension_numbers<[1], [0], [0], [1], [0, 0, 1, 1], [], []>} : vector<8x8xf32>, vector<8x18xf32>, vector<8x18xf32> -> vector<8x18xf32>
    %cst_24 = arith.constant dense<0.000000e+00> : vector<8x18xf32>
    %36 = tpu.matmul %7, %33, %cst_24 {dimension_numbers = #tpu.dot_dimension_numbers<[1], [0], [0], [1], [0, 0, 1, 1], [], []>} : vector<8x16xf32>, vector<16x18xf32>, vector<8x18xf32> -> vector<8x18xf32>
    %37 = arith.addf %35, %36 : vector<8x18xf32>
    %38 = vector.broadcast %34 : vector<1x18xf32> to vector<8x18xf32>
    %39 = arith.addf %37, %38 : vector<8x18xf32>
    %c144 = arith.constant 144 : index
    %c0_25 = arith.constant 0 : index
    %40 = vector.load %arg2[%c144, %c0_25] : memref<208x128xf32, #tpu.memory_space<vmem>>, vector<8x18xf32>
    %c152 = arith.constant 152 : index
    %c0_26 = arith.constant 0 : index
    %41 = vector.load %arg2[%c152, %c0_26] : memref<208x128xf32, #tpu.memory_space<vmem>>, vector<16x18xf32>
    %c168 = arith.constant 168 : index
    %c0_27 = arith.constant 0 : index
    %42 = vector.load %arg2[%c168, %c0_27] : memref<208x128xf32, #tpu.memory_space<vmem>>, vector<1x18xf32>
    %cst_28 = arith.constant dense<0.000000e+00> : vector<8x18xf32>
    %43 = tpu.matmul %0, %40, %cst_28 {dimension_numbers = #tpu.dot_dimension_numbers<[1], [0], [0], [1], [0, 0, 1, 1], [], []>} : vector<8x8xf32>, vector<8x18xf32>, vector<8x18xf32> -> vector<8x18xf32>
    %cst_29 = arith.constant dense<0.000000e+00> : vector<8x18xf32>
    %44 = tpu.matmul %7, %41, %cst_29 {dimension_numbers = #tpu.dot_dimension_numbers<[1], [0], [0], [1], [0, 0, 1, 1], [], []>} : vector<8x16xf32>, vector<16x18xf32>, vector<8x18xf32> -> vector<8x18xf32>
    %45 = arith.addf %43, %44 : vector<8x18xf32>
    %46 = vector.broadcast %42 : vector<1x18xf32> to vector<8x18xf32>
    %47 = arith.addf %45, %46 : vector<8x18xf32>
    %c176 = arith.constant 176 : index
    %c0_30 = arith.constant 0 : index
    %48 = vector.load %arg2[%c176, %c0_30] : memref<208x128xf32, #tpu.memory_space<vmem>>, vector<8x18xf32>
    %c184 = arith.constant 184 : index
    %c0_31 = arith.constant 0 : index
    %49 = vector.load %arg2[%c184, %c0_31] : memref<208x128xf32, #tpu.memory_space<vmem>>, vector<16x18xf32>
    %c200 = arith.constant 200 : index
    %c0_32 = arith.constant 0 : index
    %50 = vector.load %arg2[%c200, %c0_32] : memref<208x128xf32, #tpu.memory_space<vmem>>, vector<1x18xf32>
    %cst_33 = arith.constant dense<0.000000e+00> : vector<8x18xf32>
    %51 = tpu.matmul %0, %48, %cst_33 {dimension_numbers = #tpu.dot_dimension_numbers<[1], [0], [0], [1], [0, 0, 1, 1], [], []>} : vector<8x8xf32>, vector<8x18xf32>, vector<8x18xf32> -> vector<8x18xf32>
    %cst_34 = arith.constant dense<0.000000e+00> : vector<8x18xf32>
    %52 = tpu.matmul %7, %49, %cst_34 {dimension_numbers = #tpu.dot_dimension_numbers<[1], [0], [0], [1], [0, 0, 1, 1], [], []>} : vector<8x16xf32>, vector<16x18xf32>, vector<8x18xf32> -> vector<8x18xf32>
    %53 = arith.addf %51, %52 : vector<8x18xf32>
    %54 = vector.broadcast %50 : vector<1x18xf32> to vector<8x18xf32>
    %55 = arith.addf %53, %54 : vector<8x18xf32>
    %56 = arith.maximumf %15, %23 : vector<8x18xf32>
    %57 = arith.maximumf %56, %31 : vector<8x18xf32>
    %58 = arith.maximumf %57, %39 : vector<8x18xf32>
    %59 = arith.maximumf %58, %47 : vector<8x18xf32>
    %60 = arith.maximumf %59, %55 : vector<8x18xf32>
    %61 = arith.subf %15, %60 : vector<8x18xf32>
    %62 = math.exp %61 : vector<8x18xf32>
    %63 = arith.subf %23, %60 : vector<8x18xf32>
    %64 = math.exp %63 : vector<8x18xf32>
    %65 = arith.addf %62, %64 : vector<8x18xf32>
    %66 = arith.subf %31, %60 : vector<8x18xf32>
    %67 = math.exp %66 : vector<8x18xf32>
    %68 = arith.addf %65, %67 : vector<8x18xf32>
    %69 = arith.subf %39, %60 : vector<8x18xf32>
    %70 = math.exp %69 : vector<8x18xf32>
    %71 = arith.addf %68, %70 : vector<8x18xf32>
    %72 = arith.subf %47, %60 : vector<8x18xf32>
    %73 = math.exp %72 : vector<8x18xf32>
    %74 = arith.addf %71, %73 : vector<8x18xf32>
    %75 = arith.subf %55, %60 : vector<8x18xf32>
    %76 = math.exp %75 : vector<8x18xf32>
    %77 = arith.addf %74, %76 : vector<8x18xf32>
    %78 = math.log %77 : vector<8x18xf32>
    %79 = arith.addf %60, %78 : vector<8x18xf32>
    %cst_35 = arith.constant 0.000000e+00 : f32
    %80 = vector.broadcast %cst_35 : f32 to vector<8x18xf32>
    %81 = arith.subf %80, %79 : vector<8x18xf32>
    %82 = vector.extract_strided_slice %81 {offsets = [0, 0], sizes = [8, 3], strides = [1, 1]} : vector<8x18xf32> to vector<8x3xf32>
    %83 = vector.extract_strided_slice %81 {offsets = [0, 3], sizes = [8, 3], strides = [1, 1]} : vector<8x18xf32> to vector<8x3xf32>
    %84 = vector.extract_strided_slice %81 {offsets = [0, 6], sizes = [8, 3], strides = [1, 1]} : vector<8x18xf32> to vector<8x3xf32>
    %85 = vector.extract_strided_slice %81 {offsets = [0, 9], sizes = [8, 3], strides = [1, 1]} : vector<8x18xf32> to vector<8x3xf32>
    %86 = vector.extract_strided_slice %81 {offsets = [0, 12], sizes = [8, 3], strides = [1, 1]} : vector<8x18xf32> to vector<8x3xf32>
    %87 = vector.extract_strided_slice %81 {offsets = [0, 15], sizes = [8, 3], strides = [1, 1]} : vector<8x18xf32> to vector<8x3xf32>
    %88 = arith.maximumf %82, %83 : vector<8x3xf32>
    %89 = arith.maximumf %88, %84 : vector<8x3xf32>
    %90 = arith.maximumf %89, %85 : vector<8x3xf32>
    %91 = arith.maximumf %90, %86 : vector<8x3xf32>
    %92 = arith.maximumf %91, %87 : vector<8x3xf32>
    %93 = arith.subf %82, %92 : vector<8x3xf32>
    %94 = math.exp %93 : vector<8x3xf32>
    %95 = arith.subf %83, %92 : vector<8x3xf32>
    %96 = math.exp %95 : vector<8x3xf32>
    %97 = arith.addf %94, %96 : vector<8x3xf32>
    %98 = arith.subf %84, %92 : vector<8x3xf32>
    %99 = math.exp %98 : vector<8x3xf32>
    %100 = arith.addf %97, %99 : vector<8x3xf32>
    %101 = arith.subf %85, %92 : vector<8x3xf32>
    %102 = math.exp %101 : vector<8x3xf32>
    %103 = arith.addf %100, %102 : vector<8x3xf32>
    %104 = arith.subf %86, %92 : vector<8x3xf32>
    %105 = math.exp %104 : vector<8x3xf32>
    %106 = arith.addf %103, %105 : vector<8x3xf32>
    %107 = arith.subf %87, %92 : vector<8x3xf32>
    %108 = math.exp %107 : vector<8x3xf32>
    %109 = arith.addf %106, %108 : vector<8x3xf32>
    %110 = math.log %109 : vector<8x3xf32>
    %111 = arith.addf %92, %110 : vector<8x3xf32>
    %c9 = arith.constant 9 : index
    %c0_36 = arith.constant 0 : index
    %112 = vector.load %arg2[%c9, %c0_36] : memref<208x128xf32, #tpu.memory_space<vmem>>, vector<1x3xf32>
    %c10 = arith.constant 10 : index
    %c0_37 = arith.constant 0 : index
    %113 = vector.load %arg2[%c10, %c0_37] : memref<208x128xf32, #tpu.memory_space<vmem>>, vector<1x3xf32>
    %cst_38 = arith.constant 0.000000e+00 : f32
    %114 = vector.broadcast %cst_38 : f32 to vector<8x3xf32>
    %115 = arith.subf %114, %111 : vector<8x3xf32>
    %116 = vector.broadcast %112 : vector<1x3xf32> to vector<8x3xf32>
    %117 = arith.mulf %115, %116 : vector<8x3xf32>
    %118 = vector.broadcast %113 : vector<1x3xf32> to vector<8x3xf32>
    %119 = arith.addf %117, %118 : vector<8x3xf32>
    %120 = arith.negf %119 : vector<8x3xf32>
    %121 = math.exp %120 : vector<8x3xf32>
    %cst_39 = arith.constant 1.000000e+00 : f32
    %122 = vector.broadcast %cst_39 : f32 to vector<8x3xf32>
    %123 = arith.addf %122, %121 : vector<8x3xf32>
    %124 = arith.divf %122, %123 : vector<8x3xf32>
    %c0_40 = arith.constant 0 : index
    %c0_41 = arith.constant 0 : index
    %125 = vector.load %arg3[%c0_40, %c0_41] : memref<8x3xf32, #tpu.memory_space<vmem>>, vector<8x3xf32>
    tpu.vector_store %arg3[%c0_40, %c0_41], %124 {strides = array<i32>} : memref<8x3xf32, #tpu.memory_space<vmem>>, vector<8x3xf32>,
    return
  }
  func.func @transform_0(%arg0: i32) -> (i32, i32) {
    %c0_i32 = arith.constant 0 : i32
    %c0_i32_0 = arith.constant 0 : i32
    return %arg0, %c0_i32 : i32, i32
  }
  func.func @transform_1(%arg0: i32) -> (i32, i32) {
    %c0_i32 = arith.constant 0 : i32
    %c0_i32_0 = arith.constant 0 : i32
    %c0_i32_1 = arith.constant 0 : i32
    return %c0_i32, %c0_i32_0 : i32, i32
  }
  func.func @transform_2(%arg0: i32) -> (i32, i32) {
    %c0_i32 = arith.constant 0 : i32
    %c0_i32_0 = arith.constant 0 : i32
    return %arg0, %c0_i32 : i32, i32
  }
}

</mosaic_0001>

<bundles_post_ra>
// kernel: smm_multihead_forward.1
= control target key start
LH: loop header
LB: loop body
LE: loop exit
PB: predicated region body
PF: predicated region fallthrough
CT: control target
= control target key end

     0   :  { %7 = vsyncpa [#allocation3], 0  ;;  %s1368_s9 = smov [#allocation2]   ;;  %s1479_s0 = inlined_call_operand.vmem [shape: f32[8,8], index: 0, kind: input, shape index: {}]   ;;  %s1480_s1 = inlined_call_operand.hbm [shape: f32[208,128], index: 1, kind: input, shape index: {}]   ;;  %s1481_s2 = inlined_call_operand.vmem [shape: f32[8,3], index: 2, kind: output, shape index: {}]  }
   0x1   :  { %s15_s10 = sshll.u32 %s1368_s9, 4  ;;  %s1344_s13 = scalar_lea.hbm %s1480_s1, 3328  ;;  %s16_s10 = int_to_ptr.vmem [resolvable:$true] %s15_s10 }
   0x2   :  { %p1345_p0 = scmp.ne.s32.totalorder %s1480_s1, %s1344_s13  ;;  %p1348_p1 = scmp.lt.u32.totalorder %s1344_s13, %s1480_s1 }
   0x4   :  { %p1350_p2 = pnand %p1348_p1, %p1345_p0 }
   0x6   :  { %1353 = shalt.err (!%p1350_p2)
}
   0x7   :  { %s1354_s18 = scalar_lea.vmem %s16_s10, 3328  ;;  %p1359_p4 = scmp.lt.s32.totalorder %s16_s10, %s16_s10 }
   0x8   :  { %p1355_p3 = scmp.ne.s32.totalorder %s16_s10, %s1354_s18  ;;  %p1360_p5 = scmp.lt.s32.totalorder %s1354_s18, %s1354_s18 }
   0xa   :  { %p1361_p6 = por %p1360_p5, %p1359_p4 }
   0xc   :  { %p1362_p7 = pnand %p1361_p6, %p1355_p3 }
   0xe   :  { %1365 = shalt.err (!%p1362_p7)
}
   0xf   :  { %s1369_s19 = smov 128   ;;  %s1370_s20 = smov 8  }
  0x10   :  { %21 = dma.hbm_to_vmem [thread:$0]  %s1480_s1, 3328, %s16_s10, [#allocation3], %s1369_s19, %s1369_s19, %s1370_s20  }
  0x11   :  { %1366 = dma.done.wait [#allocation3], 3328  }
  0x12   :  { %1367 = vsyncadd [#allocation3], 4294963968  ;;  %v1371_v0 = vmov 0.0   ;;  %vm1372_vm0 = vmmov 0   ;;  %vm32_vm1 = vcmask 64512   ;;  %v26_v1 = vld [vmem:[#allocation2] sm:$0xff] }
  0x13   :  { %1201 = vmatprep.subr.mxu0 %v1371_v0  ;;  %1203 = vmatprep.mubr.msk.f32.mxu0 %vm1372_vm0, %v1371_v0  ;;  %v25_v2 = vld [vmem:[%s1479_s0] sm:$0xff]  ;;  %v108_v3 = vld [vmem:[#allocation2 + $0x18] sm:$0xff]  ;;  %v1373_v6 = vmov 0.0|0.0   ;;  %v107_v7 = vld [vmem:[#allocation2 + $0x10] sm:$0xff]  ;;  %vm111_vm2 = vcmask 130048   ;;  %s1374_s0 = smov 119  }
  0x14   :  { %1210 = vmatprep.mubr.msk.f32.mxu1 %vm1372_vm0, %v1371_v0  ;;  %1202 = vmatpush3.msra.mxu0 %v26_v1  ;;  %v109_v4 = vld [vmem:[#allocation2 + $0x20] sm:$0xff]  ;;  %v260_v8 = vld [vmem:[#allocation2 + $0x30] sm:$0xff]  ;;  %v1146_v13 = vld [vmem:[#allocation2 + $0x8] ss:$0 sm:$0xff]  ;;  %s1375_s1 = smov 125   ;;  %s1376_s25 = smov 116  }
  0x15   :  { %1204 = vmatmul.mubr.msk.f32.vlgmr.msra.gmra.mrb[0].mxu0 %vm32_vm1, %v25_v2  ;;  %1213 = vmatprep.subr.mxu0 %v1371_v0  ;;  %v1279_v5 = vpack.c.bf16 %v109_v4, %v108_v3  ;;  %v409_v9 = vld [vmem:[#allocation2 + $0x50] sm:$0xff]  ;;  %v261_v14 = vld [vmem:[#allocation2 + $0x38] sm:$0xff]  ;;  %v262_v15 = vld [vmem:[#allocation2 + $0x40] sm:$0xff]  ;;  %s1377_s26 = smov 122   ;;  %s1378_s27 = smov 113   ;;  %vm1139_vm3 = vcmask 23552  }
  0x16   :  { %1215 = vmatprep.mubr.msk.f32.mxu0 %vm1372_vm0, %v1371_v0  ;;  %1278 = vmatprep.subr.bf16.mxu1 %v1373_v6  ;;  %v558_v10 = vld [vmem:[#allocation2 + $0x70] sm:$0xff]  ;;  %v1282_v19 = vpack.c.bf16 %v262_v15, %v261_v14  ;;  %v410_v21 = vld [vmem:[#allocation2 + $0x58] sm:$0xff]  ;;  %v411_v22 = vld [vmem:[#allocation2 + $0x60] sm:$0xff]  ;;  %s1379_s28 = smov 6   ;;  %s1380_s29 = smov 3  }
  0x17   :  { %1280 = vmatpush3.bf16.msra.mxu1 %v1279_v5  ;;  %1214 = vmatpush3.msra.mxu0 %v107_v7  ;;  %v707_v11 = vld [vmem:[#allocation2 + $0x90] sm:$0xff]  ;;  %v1285_v23 = vpack.c.bf16 %v411_v22, %v410_v21  ;;  %v559_v24 = vld [vmem:[#allocation2 + $0x78] sm:$0xff]  ;;  %v560_v25 = vld [vmem:[#allocation2 + $0x80] sm:$0xff]  ;;  %s1381_s30 = smov 12   ;;  %s1382_s3 = smov 9  }
  0x18   :  { %1281 = vmatprep.subr.bf16.mxu1 %v1373_v6  ;;  %1225 = vmatprep.subr.mxu0 %v1371_v0  ;;  %v856_v12 = vld [vmem:[#allocation2 + $0xb0] sm:$0xff]  ;;  %v1288_v26 = vpack.c.bf16 %v560_v25, %v559_v24  ;;  %v708_v27 = vld [vmem:[#allocation2 + $0x98] sm:$0xff]  ;;  %v709_v28 = vld [vmem:[#allocation2 + $0xa0] sm:$0xff]  ;;  %s1383_s4 = smov 15  }
  0x19   :  { %1216 = vmatmul.mubr.msk.f32.vlgmr.msra.gmra.mrb[2].mxu0 %vm32_vm1, %v25_v2  ;;  %v1291_v29 = vpack.c.bf16 %v709_v28, %v708_v27  ;;  %v857_v30 = vld [vmem:[#allocation2 + $0xb8] sm:$0xff]  ;;  %v858_v31 = vld [vmem:[#allocation2 + $0xc0] sm:$0xff]  ;;  %v1150_v48 = vld [vmem:[#allocation2 + $0x28] ss:$0 sm:$0xff] }
  0x1a   :  { %1227 = vmatprep.mubr.msk.f32.mxu0 %vm1372_vm0, %v1371_v0  ;;  %1226 = vmatpush3.msra.mxu0 %v260_v8  ;;  %v1294_v32 = vpack.c.bf16 %v858_v31, %v857_v30  ;;  %v1153_v49 = vld [vmem:[#allocation2 + $0x48] ss:$0 sm:$0xff] }
  0x1b   :  { %1237 = vmatprep.subr.mxu0 %v1371_v0  ;;  %v1156_v55 = vld [vmem:[#allocation2 + $0x68] ss:$0 sm:$0xff] }
  0x1c   :  { %v1159_v61 = vld [vmem:[#allocation2 + $0x88] ss:$0 sm:$0xff] }
  0x1d   :  { %1228 = vmatmul.mubr.msk.f32.vlgmr.msra.gmra.mrb[4].mxu0 %vm32_vm1, %v25_v2  ;;  %v1162_v3 = vld [vmem:[#allocation2 + $0xa8] ss:$0 sm:$0xff] }
  0x1e   :  { %1239 = vmatprep.mubr.msk.f32.mxu0 %vm1372_vm0, %v1371_v0  ;;  %1238 = vmatpush3.msra.mxu0 %v409_v9  ;;  %v1165_v9 = vld [vmem:[#allocation2 + $0xc8] ss:$0 sm:$0xff] }
  0x1f   :  { %1249 = vmatprep.subr.mxu0 %v1371_v0 }
  0x21   :  { %1240 = vmatmul.mubr.msk.f32.vlgmr.msra.gmra.mrb[6].mxu0 %vm32_vm1, %v25_v2 }
  0x22   :  { %1251 = vmatprep.mubr.msk.f32.mxu0 %vm1372_vm0, %v1371_v0  ;;  %1250 = vmatpush3.msra.mxu0 %v558_v10 }
  0x23   :  { %1261 = vmatprep.subr.mxu0 %v1371_v0 }
  0x25   :  { %1252 = vmatmul.mubr.msk.f32.vlgmr.msra.gmra.mrb[8].mxu0 %vm32_vm1, %v25_v2 }
  0x26   :  { %1263 = vmatprep.mubr.msk.f32.mxu0 %vm1372_vm0, %v1371_v0  ;;  %1262 = vmatpush3.msra.mxu0 %v707_v11 }
  0x27   :  { %1273 = vmatprep.subr.mxu0 %v1371_v0 }
  0x29   :  { %1264 = vmatmul.mubr.msk.f32.vlgmr.msra.gmra.mrb[10].mxu0 %vm32_vm1, %v25_v2 }
  0x2a   :  { %1275 = vmatprep.mubr.msk.f32.mxu0 %vm1372_vm0, %v1371_v0  ;;  %1274 = vmatpush3.msra.mxu0 %v856_v12 }
  0x2d   :  { %1276 = vmatmul.mubr.msk.f32.vlgmr.msra.gmra.mrb[12].mxu0 %vm32_vm1, %v25_v2 }
  0xe8   :  { %v102_v16 = vpop.f32.mrb[0].mxu0 }
  0xe9   :  { %v103_v17 = vadd.f32 %v1146_v13, %v102_v16  ;;  %v1205_v18 = vpop.f32.mrb[1].mxu0 }
  0xeb   :  { %v106_v20 = vmax.f32 %v103_v17, 0.0 }
  0xec   :  { %v251_v33 = vpop.f32.mrb[2].mxu0 }
  0xed   :  { %1211 = vmatmul.mubr.msk.f32.vlgmr.msra.gmra.mrb[0].mxu1 %vm111_vm2, %v106_v20  ;;  %v1217_v34 = vpop.f32.mrb[3].mxu0 }
  0xee   :  { %1283 = vmatpush3.bf16.msra.mxu1 %v1282_v19  ;;  %1222 = vmatprep.mubr.msk.f32.mxu1 %vm1372_vm0, %v1371_v0 }
  0xef   :  { %1284 = vmatprep.subr.bf16.mxu1 %v1373_v6 }
  0xf0   :  { %v400_v35 = vpop.f32.mrb[4].mxu0 }
  0xf1   :  { %1223 = vmatmul.mubr.msk.f32.vlgmr.msra.gmra.mrb[2].mxu1 %vm111_vm2, %v106_v20  ;;  %v1229_v36 = vpop.f32.mrb[5].mxu0 }
  0xf2   :  { %1286 = vmatpush3.bf16.msra.mxu1 %v1285_v23  ;;  %1234 = vmatprep.mubr.msk.f32.mxu1 %vm1372_vm0, %v1371_v0 }
  0xf3   :  { %1287 = vmatprep.subr.bf16.mxu1 %v1373_v6 }
  0xf4   :  { %v549_v37 = vpop.f32.mrb[6].mxu0 }
  0xf5   :  { %1235 = vmatmul.mubr.msk.f32.vlgmr.msra.gmra.mrb[4].mxu1 %vm111_vm2, %v106_v20  ;;  %v1241_v38 = vpop.f32.mrb[7].mxu0 }
  0xf6   :  { %1289 = vmatpush3.bf16.msra.mxu1 %v1288_v26  ;;  %1246 = vmatprep.mubr.msk.f32.mxu1 %vm1372_vm0, %v1371_v0 }
  0xf7   :  { %1290 = vmatprep.subr.bf16.mxu1 %v1373_v6 }
  0xf8   :  { %v698_v39 = vpop.f32.mrb[8].mxu0 }
  0xf9   :  { %1247 = vmatmul.mubr.msk.f32.vlgmr.msra.gmra.mrb[6].mxu1 %vm111_vm2, %v106_v20  ;;  %v1253_v40 = vpop.f32.mrb[9].mxu0 }
  0xfa   :  { %1292 = vmatpush3.bf16.msra.mxu1 %v1291_v29  ;;  %1258 = vmatprep.mubr.msk.f32.mxu1 %vm1372_vm0, %v1371_v0 }
  0xfb   :  { %1293 = vmatprep.subr.bf16.mxu1 %v1373_v6 }
  0xfc   :  { %v847_v41 = vpop.f32.mrb[10].mxu0 }
  0xfd   :  { %1259 = vmatmul.mubr.msk.f32.vlgmr.msra.gmra.mrb[8].mxu1 %vm111_vm2, %v106_v20  ;;  %v1265_v42 = vpop.f32.mrb[11].mxu0 }
  0xfe   :  { %1295 = vmatpush3.bf16.msra.mxu1 %v1294_v32  ;;  %1270 = vmatprep.mubr.msk.f32.mxu1 %vm1372_vm0, %v1371_v0 }
 0x100   :  { %v996_v43 = vpop.f32.mrb[12].mxu0 }
 0x101   :  { %1271 = vmatmul.mubr.msk.f32.vlgmr.msra.gmra.mrb[10].mxu1 %vm111_vm2, %v106_v20  ;;  %v1277_v44 = vpop.f32.mrb[13].mxu0 }
 0x1c0   :  { %v181_v45 = vpop.f32.mrb[0].mxu1 }
 0x1c1   :  { %v252_v46 = vadd.f32 %v251_v33, %v181_v45  ;;  %v1212_v47 = vpop.f32.mrb[1].mxu1 }
 0x1c3   :  { %v259_v53 = vadd.f32 %v1150_v48, %v252_v46 }
 0x1c4   :  { %v330_v50 = vpop.f32.mrb[2].mxu1 }
 0x1c5   :  { %v401_v51 = vadd.f32 %v400_v35, %v330_v50  ;;  %v1224_v52 = vpop.f32.mrb[3].mxu1 }
 0x1c7   :  { %v408_v54 = vadd.f32 %v1153_v49, %v401_v51 }
 0x1c8   :  { %v479_v56 = vpop.f32.mrb[4].mxu1 }
 0x1c9   :  { %v1005_v57 = vmax.f32 %v259_v53, %v408_v54  ;;  %v550_v58 = vadd.f32 %v549_v37, %v479_v56  ;;  %v1236_v59 = vpop.f32.mrb[5].mxu1 }
 0x1cb   :  { %v557_v60 = vadd.f32 %v1156_v55, %v550_v58 }
 0x1cc   :  { %v628_v62 = vpop.f32.mrb[6].mxu1 }
 0x1cd   :  { %v1006_v63 = vmax.f32 %v1005_v57, %v557_v60  ;;  %v699_v0 = vadd.f32 %v698_v39, %v628_v62  ;;  %v1248_v1 = vpop.f32.mrb[7].mxu1 }
 0x1cf   :  { %v706_v2 = vadd.f32 %v1159_v61, %v699_v0 }
 0x1d0   :  { %v777_v4 = vpop.f32.mrb[8].mxu1 }
 0x1d1   :  { %v1007_v5 = vmax.f32 %v1006_v63, %v706_v2  ;;  %v848_v6 = vadd.f32 %v847_v41, %v777_v4  ;;  %v1260_v7 = vpop.f32.mrb[9].mxu1 }
 0x1d3   :  { %v855_v8 = vadd.f32 %v1162_v3, %v848_v6 }
 0x1d4   :  { %v926_v10 = vpop.f32.mrb[10].mxu1 }
 0x1d5   :  { %v1008_v11 = vmax.f32 %v1007_v5, %v855_v8  ;;  %v997_v12 = vadd.f32 %v996_v43, %v926_v10  ;;  %v1272_v13 = vpop.f32.mrb[11].mxu1 }
 0x1d7   :  { %v1004_v14 = vadd.f32 %v1165_v9, %v997_v12 }
 0x1d9   :  { %v1009_v15 = vmax.f32 %v1008_v11, %v1004_v14 }
 0x1db   :  { %v1010_v16 = vsub.f32 %v259_v53, %v1009_v15  ;;  %v1013_v17 = vsub.f32 %v408_v54, %v1009_v15  ;;  %v1017_v18 = vsub.f32 %v557_v60, %v1009_v15  ;;  %v1021_v19 = vsub.f32 %v706_v2, %v1009_v15 }
 0x1dc   :  { %v1025_v20 = vsub.f32 %v855_v8, %v1009_v15  ;;  %v1029_v21 = vsub.f32 %v1004_v14, %v1009_v15 }
 0x1dd   :  { %v1011_v22 = vmul.f32 1.442695, %v1010_v16  ;;  %v1014_v23 = vmul.f32 1.442695, %v1013_v17  ;;  %v1018_v24 = vmul.f32 1.442695, %v1017_v18 }
 0x1de   :  { %v1022_v25 = vmul.f32 1.442695, %v1021_v19  ;;  %v1026_v26 = vmul.f32 1.442695, %v1025_v20  ;;  %v1030_v27 = vmul.f32 1.442695, %v1029_v21 }
 0x1df   :  { %1312 = vpow2.f32 %v1011_v22 }
 0x1e0   :  { %1314 = vpow2.f32 %v1014_v23 }
 0x1e1   :  { %1316 = vpow2.f32 %v1018_v24 }
 0x1e2   :  { %1318 = vpow2.f32 %v1022_v25  ;;  %v1166_v25 = vld [vmem:[#allocation2 + $0x9] ss:$0 sm:$0xff] }
 0x1e3   :  { %1320 = vpow2.f32 %v1026_v26 }
 0x1e4   :  { %1322 = vpow2.f32 %v1030_v27  ;;  %v1167_v27 = vld [vmem:[#allocation2 + $0xa] ss:$0 sm:$0xff] }
 0x1e9   :  { %v1313_v28 = vpop.eup %1312 }
 0x1ea   :  { %v1315_v29 = vpop.eup %1314 }
 0x1eb   :  { %v1016_v30 = vadd.f32 %v1315_v29, %v1313_v28  ;;  %v1317_v31 = vpop.eup %1316 }
 0x1ec   :  { %v1319_v33 = vpop.eup %1318 }
 0x1ed   :  { %v1020_v32 = vadd.f32 %v1317_v31, %v1016_v30  ;;  %v1321_v35 = vpop.eup %1320 }
 0x1ee   :  { %v1323_v37 = vpop.eup %1322 }
 0x1ef   :  { %v1024_v34 = vadd.f32 %v1319_v33, %v1020_v32 }
 0x1f1   :  { %v1028_v36 = vadd.f32 %v1321_v35, %v1024_v34 }
 0x1f3   :  { %v1032_v38 = vadd.f32 %v1323_v37, %v1028_v36 }
 0x1f5   :  { %1324 = vlog2.f32 %v1032_v38 }
 0x1ff   :  { %v1325_v39 = vpop.eup %1324 }
 0x200   :  { %v1034_v40 = vmul.f32 0.6931472, %v1325_v39 }
 0x202   :  { %v1035_v41 = vadd.f32 %v1034_v40, %v1009_v15 }
 0x204   :  { %v1036_v42 = vsub.f32 0.0, %v1035_v41 }
 0x206   :  { %1046 = vrot.lane.b32.xlu1 %v1036_v42, %s1374_s0  ;;  %1038 = vrot.lane.b32.xlu0 %v1036_v42, %s1375_s1 }
 0x20a   :  { %1050 = vrot.lane.b32.xlu1 %v1036_v42, %s1376_s25  ;;  %1042 = vrot.lane.b32.xlu0 %v1036_v42, %s1377_s26 }
 0x20e   :  { %1054 = vrot.lane.b32.xlu0 %v1036_v42, %s1378_s27 }
 0x278   :  { %v1039_v43 = vpop.permute.xlu0 %1038  ;;  %v1047_v44 = vpop.permute.xlu1 %1046 }
 0x279   :  { %v1041_v45 = vmax.f32 %v1036_v42, %v1039_v43 }
 0x27c   :  { %v1043_v46 = vpop.permute.xlu0 %1042  ;;  %v1051_v49 = vpop.permute.xlu1 %1050 }
 0x27d   :  { %v1045_v47 = vmax.f32 %v1041_v45, %v1043_v46 }
 0x27f   :  { %v1049_v48 = vmax.f32 %v1045_v47, %v1047_v44 }
 0x280   :  { %v1055_v51 = vpop.permute.xlu0 %1054 }
 0x281   :  { %v1053_v50 = vmax.f32 %v1049_v48, %v1051_v49 }
 0x283   :  { %v1057_v52 = vmax.f32 %v1053_v50, %v1055_v51 }
 0x285   :  { %1073 = vrot.lane.b32.xlu0 %v1057_v52, %s1379_s28  ;;  %1062 = vrot.lane.b32.xlu1 %v1057_v52, %s1380_s29  ;;  %v1058_v9 = vsub.f32 %v1036_v42, %v1057_v52 }
 0x287   :  { %v1059_v10 = vmul.f32 1.442695, %v1058_v9 }
 0x289   :  { %1095 = vrot.lane.b32.xlu0 %v1057_v52, %s1381_s30  ;;  %1084 = vrot.lane.b32.xlu1 %v1057_v52, %s1382_s3 }
 0x28d   :  { %1106 = vrot.lane.b32.xlu1 %v1057_v52, %s1383_s4 }
 0x2f7   :  { %v1074_v53 = vpop.permute.xlu0 %1073  ;;  %v1063_v54 = vpop.permute.xlu1 %1062 }
 0x2f8   :  { %v1076_v55 = vsub.f32 %v1036_v42, %v1074_v53  ;;  %v1065_v56 = vsub.f32 %v1036_v42, %v1063_v54 }
 0x2fa   :  { %v1077_v57 = vmul.f32 1.442695, %v1076_v55  ;;  %v1066_v58 = vmul.f32 1.442695, %v1065_v56 }
 0x2fb   :  { %v1096_v59 = vpop.permute.xlu0 %1095  ;;  %v1085_v60 = vpop.permute.xlu1 %1084 }
 0x2fc   :  { %1326 = vpow2.f32 %v1077_v57  ;;  %v1098_v61 = vsub.f32 %v1036_v42, %v1096_v59  ;;  %v1087_v62 = vsub.f32 %v1036_v42, %v1085_v60 }
 0x2fd   :  { %1328 = vpow2.f32 %v1066_v58 }
 0x2fe   :  { %v1099_v63 = vmul.f32 1.442695, %v1098_v61  ;;  %v1088_v0 = vmul.f32 1.442695, %v1087_v62 }
 0x2ff   :  { %v1107_v1 = vpop.permute.xlu1 %1106 }
 0x300   :  { %1330 = vpow2.f32 %v1099_v63  ;;  %v1109_v2 = vsub.f32 %v1036_v42, %v1107_v1 }
 0x301   :  { %1332 = vpow2.f32 %v1088_v0 }
 0x302   :  { %v1110_v3 = vmul.f32 1.442695, %v1109_v2 }
 0x304   :  { %1334 = vpow2.f32 %v1110_v3 }
 0x305   :  { %1336 = vpow2.f32 %v1059_v10 }
 0x306   :  { %v1327_v4 = vpop.eup %1326 }
 0x307   :  { %v1329_v5 = vpop.eup %1328  ;;  %1080 = vrot.lane.b32.xlu1 %v1327_v4, %s1377_s26 }
 0x308   :  { %1069 = vrot.lane.b32.xlu0 %v1329_v5, %s1375_s1 }
 0x30a   :  { %v1331_v6 = vpop.eup %1330 }
 0x30b   :  { %v1333_v7 = vpop.eup %1332  ;;  %1102 = vrot.lane.b32.xlu1 %v1331_v6, %s1376_s25 }
 0x30c   :  { %1091 = vrot.lane.b32.xlu0 %v1333_v7, %s1374_s0 }
 0x30e   :  { %v1335_v8 = vpop.eup %1334 }
 0x30f   :  { %v1337_v11 = vpop.eup %1336 }
 0x310   :  { %1113 = vrot.lane.b32.xlu0 %v1335_v8, %s1378_s27 }
 0x379   :  { %v1081_v13 = vpop.permute.xlu1 %1080 }
 0x37a   :  { %v1070_v12 = vpop.permute.xlu0 %1069 }
 0x37b   :  { %v1072_v14 = vadd.f32 %v1337_v11, %v1070_v12 }
 0x37d   :  { %v1083_v15 = vadd.f32 %v1081_v13, %v1072_v14  ;;  %v1103_v18 = vpop.permute.xlu1 %1102 }
 0x37e   :  { %v1092_v16 = vpop.permute.xlu0 %1091 }
 0x37f   :  { %v1094_v17 = vadd.f32 %v1092_v16, %v1083_v15 }
 0x381   :  { %v1105_v19 = vadd.f32 %v1103_v18, %v1094_v17 }
 0x382   :  { %v1114_v20 = vpop.permute.xlu0 %1113 }
 0x383   :  { %v1116_v21 = vadd.f32 %v1114_v20, %v1105_v19 }
 0x385   :  { %1338 = vlog2.f32 %v1116_v21 }
 0x38f   :  { %v1339_v22 = vpop.eup %1338 }
 0x390   :  { %v1118_v23 = vmul.f32 0.6931472, %v1339_v22 }
 0x392   :  { %v1119_v24 = vadd.f32 %v1118_v23, %v1057_v52 }
 0x394   :  { %v1122_v26 = vsub.f32 0.0, %v1119_v24 }
 0x396   :  { %v1127_v28 = vmul.f32 %v1166_v25, %v1122_v26 }
 0x398   :  { %v1132_v29 = vadd.f32 %v1167_v27, %v1127_v28 }
 0x39a   :  { %v1168_v30 = vmul.f32 -1.442695, %v1132_v29 }
 0x39c   :  { %1340 = vpow2.f32 %v1168_v30 }
 0x3a6   :  { %v1341_v31 = vpop.eup %1340 }
 0x3a7   :  { %v1136_v32 = vadd.f32 1.0, %v1341_v31 }
 0x3a9   :  { %1342 = vrcp.f32 %v1136_v32 }
 0x3b3   :  { %v1343_v33 = vpop.eup %1342 }
 0x3b4   :  { %1140 = vst.msk [vmem:[%s1481_s2] sm:$0xff] %vm1139_vm3, %v1343_v33 }
 0x3b5   :  { %1145 = vsyncpa [#allocation3], 1 }

</bundles_post_ra>
